<compile_context>
chip_gen: v6e
topology: v6e:2x2x1
jax: 0.10.0
libtpu: 0.0.40
codegen_flags: <defaults>
</compile_context>

<pallas_src>
import jax
import jax.numpy as jnp
from jax.experimental import pallas as pl
from jax.experimental.pallas import tpu as pltpu

_EPS = 1e-12                           # torch F.normalize default eps
_VMEM_LIMIT_BYTES = 48 * 1024 * 1024   # explicit (v5e scoped default is 16 MiB)
_VMEM_BUDGET_BYTES = 36 * 1024 * 1024  # soft cap incl. pipeline bufs + f32 temps
_MIN_BLOCK_BYTES = 1 * 1024 * 1024     # never shrink io tiles below this
_MIN_STEPS = 8                         # target grid length for pipelining / 2 TCs


def _l2norm_kernel(x_ref, o_ref):
    """Normalize along axis 1 (channels) of the block.

    Block layout is (TB, C, TH, 128) or (TB, C, THW); channels are axis 1.
    """
    x = x_ref[...].astype(jnp.float32)
    sq_sum = jnp.sum(x * x, axis=1, keepdims=True)
    # 1 / max(||x||, eps) == rsqrt(max(sum x^2, eps^2)); rsqrt runs on the EUP.
    inv = jax.lax.rsqrt(jnp.maximum(sq_sum, _EPS * _EPS))
    o_ref[...] = (x * inv).astype(o_ref.dtype)


def _cost(n, c, hw, itemsize):
    total = n * c * hw
    return pl.CostEstimate(
        flops=3 * total,            # square + reduce-add + scale
        transcendentals=n * hw,     # one rsqrt per spatial position
        bytes_accessed=2 * total * itemsize,
    )


def _enforce_min_steps(n, tb, extent, tile, quantum, elems_per_unit, itemsize):
    """Shrink (tb, tile) until the grid has >= _MIN_STEPS steps, but never let
    the per-buffer block fall below _MIN_BLOCK_BYTES (the op is purely
    HBM-bound, so tiny blocks just pay per-step overhead)."""
    while True:
        steps = pl.cdiv(n, tb) * pl.cdiv(extent, tile)
        if steps >= _MIN_STEPS:
            break
        if tb > 1:                                    # split batch first
            cand_tb, cand_tile = (tb + 1) // 2, tile
        elif tile > quantum:                          # then split spatial
            cand_tb, cand_tile = tb, max(quantum, (tile // 2) // quantum * quantum)
        else:
            break
        if cand_tb * cand_tile * elems_per_unit * itemsize < _MIN_BLOCK_BYTES:
            break
        tb, tile = cand_tb, cand_tile
    return tb, tile


def l2norm(x_nchw):
    """L2-normalize along the channel dim (dim=1) of an NCHW tensor."""
    N, C, H, W = x_nchw.shape
    HW = H * W
    dtype = x_nchw.dtype
    itemsize = jnp.dtype(dtype).itemsize

    # Per-element VMEM footprint: double-buffered in + out (pipeline) plus
    # roughly two block-sized f32 temporaries inside the kernel.
    per_elem_bytes = 4 * itemsize + 8
    max_block_elems = _VMEM_BUDGET_BYTES // per_elem_bytes

    cparams = pltpu.CompilerParams(
        dimension_semantics=("parallel", "parallel"),
        vmem_limit_bytes=_VMEM_LIMIT_BYTES,
    )
    cost = _cost(N, C, HW, itemsize)

    rows = HW // 128
    use_preferred = HW % 128 == 0 and C * min(rows, 8) * 128 <= max_block_elems

    if use_preferred:
        # Spatial fills sublanes AND lanes; the channel reduction is a short
        # VALU add chain over C vregs (no padded cross-sublane XLU reduce).
        if rows <= 8:
            th = rows                                   # full extent (allowed)
        else:
            th = min(rows, (max_block_elems // (C * 128)) // 8 * 8)
        if th == rows:
            tb = min(N, max(1, max_block_elems // (C * rows * 128)))
        else:
            tb = 1
        tb, th = _enforce_min_steps(N, tb, rows, th, 8, C * 128, itemsize)

        x = x_nchw.reshape(N, C, rows, 128)
        spec = pl.BlockSpec((tb, C, th, 128), lambda b, s: (b, 0, s, 0))
        out = pl.pallas_call(
            _l2norm_kernel,
            out_shape=jax.ShapeDtypeStruct((N, C, rows, 128), dtype),
            grid_spec=pltpu.PrefetchScalarGridSpec(
                num_scalar_prefetch=0,
                grid=(pl.cdiv(N, tb), pl.cdiv(rows, th)),
                in_specs=[spec],
                out_specs=spec,
            ),
            compiler_params=cparams,
            cost_estimate=cost,
        )(x)
    else:
        # Channels on sublanes (full-extent dim), spatial tiled on lanes.
        # Also covers huge C, where the minimum block is only (C, 128) elems.
        lanes_fit = max_block_elems // C
        if lanes_fit >= HW:
            thw = HW
            tb = min(N, max(1, max_block_elems // (C * HW)))
        elif lanes_fit >= 128:
            thw = (lanes_fit // 128) * 128
            tb = 1
        else:
            # TODO(synk): two-pass channel tiling for C > ~max_block_elems/128;
            # this block intentionally overshoots the soft VMEM budget.
            thw = min(HW, 128)
            tb = 1
        tb, thw = _enforce_min_steps(N, tb, HW, thw, 128, C, itemsize)

        x = x_nchw.reshape(N, C, HW)
        spec = pl.BlockSpec((tb, C, thw), lambda b, s: (b, 0, s))
        out = pl.pallas_call(
            _l2norm_kernel,
            out_shape=jax.ShapeDtypeStruct((N, C, HW), dtype),
            grid_spec=pltpu.PrefetchScalarGridSpec(
                num_scalar_prefetch=0,
                grid=(pl.cdiv(N, tb), pl.cdiv(HW, thw)),
                in_specs=[spec],
                out_specs=spec,
            ),
            compiler_params=cparams,
            cost_estimate=cost,
        )(x)

    return out.reshape(N, C, H, W)


def _reference_l2norm(x_nchw):
    # Pure-JAX reference mirroring F.normalize(x, p=2, dim=1).
    norm = jnp.sqrt(jnp.sum(x_nchw * x_nchw, axis=1, keepdims=True))
    return x_nchw / jnp.maximum(norm, _EPS)


if __name__ == "__main__":
    key = jax.random.PRNGKey(0)

    # Preferred path (H*W % 128 == 0), shape from the module's typical use.
    x1 = jax.random.normal(key, (2, 4, 16, 16), dtype=jnp.float32)
    y1 = jax.block_until_ready(l2norm(x1))
    assert y1.shape == x1.shape and y1.dtype == x1.dtype
    assert jnp.allclose(y1, _reference_l2norm(x1), atol=1e-6, rtol=1e-6)

    # Fallback path (H*W not a multiple of 128).
    x2 = jax.random.normal(jax.random.PRNGKey(1), (2, 4, 7, 9), dtype=jnp.float32)
    y2 = jax.block_until_ready(l2norm(x2))
    assert y2.shape == x2.shape and y2.dtype == x2.dtype
    assert jnp.allclose(y2, _reference_l2norm(x2), atol=1e-6, rtol=1e-6)

    print("KERNEL_OK")
</pallas_src>

<mosaic_0001>
module attributes {stable_mosaic.version = 11 : i64} {
  func.func @_l2norm_kernel(%arg0: i32, %arg1: i32, %arg2: memref<2x4x2x128xf32, #tpu.memory_space<vmem>>, %arg3: memref<2x4x2x128xf32, #tpu.memory_space<vmem>>) attributes {dimension_semantics = [#tpu.dimension_semantics<parallel>, #tpu.dimension_semantics<parallel>], iteration_bounds = array<i64: 1, 1>, scalar_prefetch = 0 : i64, scratch_operands = 0 : i64, tpu.core_type = #tpu.core_type<tc>, window_params = [{transform_indices = @transform_0, window_bounds = array<i64: 2, 4, 2, 128>}, {transform_indices = @transform_1, window_bounds = array<i64: 2, 4, 2, 128>}]} {
    %c0 = arith.constant 0 : index
    %c0_0 = arith.constant 0 : index
    %c0_1 = arith.constant 0 : index
    %c0_2 = arith.constant 0 : index
    %0 = vector.load %arg2[%c0, %c0_0, %c0_1, %c0_2] : memref<2x4x2x128xf32, #tpu.memory_space<vmem>>, vector<2x4x2x128xf32>
    %1 = arith.mulf %0, %0 : vector<2x4x2x128xf32>
    %cst = arith.constant dense<0.000000e+00> : vector<2x2x128xf32>
    %2 = vector.multi_reduction <add>, %1, %cst [1] : vector<2x4x2x128xf32> to vector<2x2x128xf32>
    %3 = vector.shape_cast %2 : vector<2x2x128xf32> to vector<2x1x2x128xf32>
    %cst_3 = arith.constant 1.000000e-24 : f32
    %4 = vector.broadcast %cst_3 : f32 to vector<2x1x2x128xf32>
    %5 = arith.maximumf %3, %4 : vector<2x1x2x128xf32>
    %6 = math.rsqrt %5 : vector<2x1x2x128xf32>
    %7 = vector.broadcast %6 : vector<2x1x2x128xf32> to vector<2x4x2x128xf32>
    %8 = arith.mulf %0, %7 : vector<2x4x2x128xf32>
    %c0_4 = arith.constant 0 : index
    %c0_5 = arith.constant 0 : index
    %c0_6 = arith.constant 0 : index
    %c0_7 = arith.constant 0 : index
    %9 = vector.load %arg3[%c0_4, %c0_5, %c0_6, %c0_7] : memref<2x4x2x128xf32, #tpu.memory_space<vmem>>, vector<2x4x2x128xf32>
    tpu.vector_store %arg3[%c0_4, %c0_5, %c0_6, %c0_7], %8 {strides = array<i32>} : memref<2x4x2x128xf32, #tpu.memory_space<vmem>>, vector<2x4x2x128xf32>,
    return
  }
  func.func @transform_0(%arg0: i32, %arg1: i32) -> (i32, i32, i32, i32) {
    %c0_i32 = arith.constant 0 : i32
    %c0_i32_0 = arith.constant 0 : i32
    %c0_i32_1 = arith.constant 0 : i32
    return %arg0, %c0_i32, %arg1, %c0_i32_0 : i32, i32, i32, i32
  }
  func.func @transform_1(%arg0: i32, %arg1: i32) -> (i32, i32, i32, i32) {
    %c0_i32 = arith.constant 0 : i32
    %c0_i32_0 = arith.constant 0 : i32
    %c0_i32_1 = arith.constant 0 : i32
    return %arg0, %c0_i32, %arg1, %c0_i32_0 : i32, i32, i32, i32
  }
}

</mosaic_0001>

<bundles_post_ra>
// kernel: tpu_custom_call.1
= control target key start
LH: loop header
LB: loop body
LE: loop exit
PB: predicated region body
PF: predicated region fallthrough
CT: control target
= control target key end

     0   :  { %6 = vsyncpa [#allocation3], 0  ;;  %s177_s0 = inlined_call_operand.hbm [shape: f32[2,4,2,128], index: 0, kind: input, shape index: {}]   ;;  %s178_s1 = inlined_call_operand.hbm [shape: f32[2,4,2,128], index: 1, kind: output, shape index: {}]  }
   0x1   :  { %7 = vsyncpa [#allocation4], 0  ;;  %s143_s6 = smov [#allocation2]  }
   0x2   :  { %s13_s7 = sshll.u32 %s143_s6, 4  ;;  %s14_s7 = int_to_ptr.vmem [resolvable:$true] %s13_s7 }
   0x3   :  { %s107_s8 = scalar_lea.vmem %s14_s7, 256  ;;  %p112_p1 = scmp.lt.s32.totalorder %s14_s7, %s14_s7 }
   0x4   :  { %p108_p0 = scmp.ne.s32.totalorder %s14_s7, %s107_s8  ;;  %p113_p2 = scmp.lt.s32.totalorder %s107_s8, %s107_s8 }
   0x6   :  { %p114_p3 = por %p113_p2, %p112_p1 }
   0x8   :  { %p115_p4 = pnand %p114_p3, %p108_p0 }
   0xa   :  { %118 = shalt.err (!%p115_p4)
}
   0xb   :  { %s144_s9 = smov 32   ;;  %s145_s10 = smov 2  }
   0xc   :  { %19 = dma.hbm_to_vmem [thread:$0]  %s177_s0, 256, %s14_s7, [#allocation3], %s144_s9, %s144_s9, %s145_s10  }
   0xd   :  { %139 = dma.done.wait [#allocation3], 256  }
   0xe   :  { %140 = vsyncadd [#allocation3], 4294967040  ;;  %vm39_vm0 = vcmask 1041408   ;;  %v23_v0 = vld [vmem:[#allocation2] sm:$0x3]  ;;  %s146_s0 = smov [#allocation5]  }
   0xf   :  { %v24_v1 = vld [vmem:[#allocation2 + $0x2] sm:$0x3]  ;;  %v25_v2 = vld [vmem:[#allocation2 + $0x4] sm:$0x3]  ;;  %v26_v3 = vld [vmem:[#allocation2 + $0x6] sm:$0x3]  ;;  %v31_v4 = vmul.f32 %v23_v0, %v23_v0 }
  0x10   :  { %v32_v5 = vmul.f32 %v24_v1, %v24_v1  ;;  %v33_v6 = vmul.f32 %v25_v2, %v25_v2  ;;  %v27_v7 = vld [vmem:[#allocation2 + $0x8] sm:$0x3]  ;;  %v28_v8 = vld [vmem:[#allocation2 + $0xa] sm:$0x3]  ;;  %v34_v9 = vmul.f32 %v26_v3, %v26_v3  ;;  %v29_v10 = vld [vmem:[#allocation2 + $0xc] sm:$0x3] }
  0x11   :  { %v30_v11 = vld [vmem:[#allocation2 + $0xe] sm:$0x3]  ;;  %v35_v12 = vmul.f32 %v27_v7, %v27_v7  ;;  %v36_v13 = vmul.f32 %v28_v8, %v28_v8  ;;  %v40_v14 = vsel %vm39_vm0, %v31_v4, 0.0  ;;  %v37_v17 = vmul.f32 %v29_v10, %v29_v10  ;;  %s79_s13 = sshll.u32 %s146_s0, 4  ;;  %s80_s13 = int_to_ptr.vmem [resolvable:$true] %s79_s13 }
  0x12   :  { %v41_v15 = vsel %vm39_vm0, %v32_v5, 0.0  ;;  %v43_v16 = vsel %vm39_vm0, %v33_v6, 0.0  ;;  %v38_v19 = vmul.f32 %v30_v11, %v30_v11  ;;  %v45_v21 = vsel %vm39_vm0, %v34_v9, 0.0  ;;  %s119_s14 = scalar_lea.vmem %s80_s13, 256  ;;  %p124_p6 = scmp.lt.s32.totalorder %s80_s13, %s80_s13 }
  0x13   :  { %v42_v18 = vadd.f32 %v41_v15, %v40_v14  ;;  %v47_v20 = vsel %vm39_vm0, %v35_v12, 0.0  ;;  %v48_v22 = vsel %vm39_vm0, %v36_v13, 0.0  ;;  %v50_v23 = vsel %vm39_vm0, %v37_v17, 0.0  ;;  %p120_p5 = scmp.ne.s32.totalorder %s80_s13, %s119_s14  ;;  %p125_p7 = scmp.lt.s32.totalorder %s119_s14, %s119_s14 }
  0x14   :  { %v49_v25 = vadd.f32 %v48_v22, %v47_v20  ;;  %v52_v26 = vsel %vm39_vm0, %v38_v19, 0.0 }
  0x15   :  { %v44_v24 = vadd.f32 %v43_v16, %v42_v18  ;;  %p126_p8 = por %p125_p7, %p124_p6 }
  0x16   :  { %v51_v28 = vadd.f32 %v50_v23, %v49_v25 }
  0x17   :  { %v46_v27 = vadd.f32 %v45_v21, %v44_v24  ;;  %p127_p9 = pnand %p126_p8, %p120_p5 }
  0x18   :  { %v53_v30 = vadd.f32 %v52_v26, %v51_v28 }
  0x19   :  { %v54_v29 = vmax.f32 %v46_v27, 1e-24 }
  0x1a   :  { %v55_v31 = vmax.f32 %v53_v30, 1e-24 }
  0x1b   :  { %95 = vrsqrt.f32 %v54_v29 }
  0x1c   :  { %97 = vrsqrt.f32 %v55_v31 }
  0x28   :  { %v96_v32 = vpop.eup %95 }
  0x29   :  { %v58_v33 = vmul.f32 %v96_v32, %v23_v0  ;;  %v59_v34 = vmul.f32 %v96_v32, %v24_v1  ;;  %v60_v35 = vmul.f32 %v96_v32, %v25_v2  ;;  %v61_v36 = vmul.f32 %v96_v32, %v26_v3  ;;  %v98_v37 = vpop.eup %97 }
  0x2a   :  { %v62_v38 = vmul.f32 %v98_v37, %v27_v7  ;;  %v63_v39 = vmul.f32 %v98_v37, %v28_v8  ;;  %v64_v40 = vmul.f32 %v98_v37, %v29_v10  ;;  %v65_v41 = vmul.f32 %v98_v37, %v30_v11 }
  0x2b   :  { %66 = vst [vmem:[#allocation5] sm:$0x3] %v58_v33  ;;  %67 = vst [vmem:[#allocation5 + $0x2] sm:$0x3] %v59_v34 }
  0x2c   :  { %68 = vst [vmem:[#allocation5 + $0x4] sm:$0x3] %v60_v35  ;;  %69 = vst [vmem:[#allocation5 + $0x6] sm:$0x3] %v61_v36 }
  0x2d   :  { %70 = vst [vmem:[#allocation5 + $0x8] sm:$0x3] %v62_v38  ;;  %71 = vst [vmem:[#allocation5 + $0xa] sm:$0x3] %v63_v39 }
  0x2e   :  { %72 = vst [vmem:[#allocation5 + $0xc] sm:$0x3] %v64_v40  ;;  %73 = vst [vmem:[#allocation5 + $0xe] sm:$0x3] %v65_v41 }
  0x2f   :  { %130 = shalt.err (!%p127_p9)
}
  0x30   :  { %85 = dma.vmem_to_hbm [thread:$0]  %s80_s13, 256, %s178_s1, [#allocation4], %s144_s9, %s144_s9, %s145_s10  }
  0x31   :  { %141 = dma.done.wait [#allocation4], 256  }
  0x32   :  { %142 = vsyncadd [#allocation4], 4294967040 }
  0x33   :  { %89 = vsyncpa [#allocation3], 1 }
  0x34   :  { %90 = vsyncpa [#allocation4], 1 }

</bundles_post_ra>
